<compile_context>
chip_gen: v7x
topology: tpu7x:2x2x1
jax: 0.10.0
libtpu: 0.0.40
codegen_flags: <defaults>
</compile_context>

<pallas_src>
import functools

import jax
import jax.numpy as jnp
from jax.experimental import pallas as pl
from jax.experimental.pallas import tpu as pltpu


# ---------------------------------------------------------------------------
# Kernel
# ---------------------------------------------------------------------------
def _mlp_kernel(n_layers, compute_dtype, *refs):
    # refs layout: x, w_in, b_in, [w_i, b_i]*n_layers, w_out, b_out, out_ref
    x_ref, w_in_ref, b_in_ref = refs[0], refs[1], refs[2]
    w_out_ref, b_out_ref = refs[-3], refs[-2]
    out_ref = refs[-1]
    layer_refs = refs[3:3 + 2 * n_layers]

    def dense(h, w_ref, b_ref):
        # MXU matmul (bf16 or f32 inputs), f32 accumulate, f32 bias add.
        return jnp.dot(h.astype(compute_dtype), w_ref[...],
                       preferred_element_type=jnp.float32) + b_ref[...]

    # inLayer + ReLU
    h = jnp.maximum(dense(x_ref[...], w_in_ref, b_in_ref), 0.0)

    # hiddenLayer: Linear -> ReLU (previous BN pre-folded into this Linear;
    # Dropout identity in eval mode).
    for i in range(n_layers):
        h = jnp.maximum(dense(h, layer_refs[2 * i], layer_refs[2 * i + 1]), 0.0)

    # outLayer (last BN folded in) + numerically-stable Softmax(dim=1).
    logits = dense(h, w_out_ref, b_out_ref)
    m = jnp.max(logits, axis=1, keepdims=True)
    e = jnp.exp(logits - m)
    denom = jnp.sum(e, axis=1, keepdims=True)
    # Exact division (not approx reciprocal) so probabilities sum to 1.
    out_ref[...] = (e / denom).astype(out_ref.dtype)


# ---------------------------------------------------------------------------
# Helpers
# ---------------------------------------------------------------------------
def _round_up(x, m):
    return (x + m - 1) // m * m


def _pad2(a, rows, cols):
    r, c = a.shape
    if r == rows and c == cols:
        return a
    return jnp.pad(a, ((0, rows - r), (0, cols - c)))


def _pad_dim(d):
    # Lane-dense padding.  Dims >=192 go to 256 multiples so v6e/v7x 2x256x256
    # MXUs run full-width passes (256 is also 128-aligned, so v5e stays legal).
    return _round_up(d, 256) if d >= 192 else _round_up(d, 128)


def _vmem_cap_bytes(headroom=16 * 2**20, fallback=48 * 2**20):
    """Generation-aware VMEM cap: physical capacity minus headroom."""
    try:
        cap = int(pltpu.get_tpu_info().vmem_capacity_bytes) - headroom
        return max(cap, 32 * 2**20)
    except Exception:
        return fallback  # conservative: fits v7x's 64 MiB with headroom


# ---------------------------------------------------------------------------
# Parameter preparation (done ONCE, not per forward call)
# ---------------------------------------------------------------------------
def fold_batchnorm(params, n_layers, eps=1e-5):
    """Fold eval-mode BN_i (after ReLU of hidden Linear i) into the next
    Linear (hidden Linear i+1, or the output Linear for the last BN)."""
    folded = []
    prev_scale = None   # (hidden,)
    prev_shift = None   # (1, hidden)
    for i in range(n_layers):
        lp = params["layers"][i]
        w, b = lp["w"], lp["b"]
        if prev_scale is not None:
            b = b + prev_shift @ w
            w = w * prev_scale[:, None]
        folded.append((w, b))
        s = lp["gamma"] * jax.lax.rsqrt(lp["running_var"] + eps)   # (1, hidden)
        t = lp["beta"] - lp["running_mean"] * s                    # (1, hidden)
        prev_scale = s.reshape(-1)
        prev_shift = t
    w_out, b_out = params["w_out"], params["b_out"]
    if prev_scale is not None:
        b_out = b_out + prev_shift @ w_out
        w_out = w_out * prev_scale[:, None]
    return params["w_in"], params["b_in"], folded, w_out, b_out


def prepare_params(params, n_layers, num_classes, *, compute_dtype=jnp.bfloat16):
    """Fold BN, pad to lane-dense shapes and cast — once per model."""
    input_size, hidden_size = params["w_in"].shape
    w_in, b_in, layers, w_out, b_out = fold_batchnorm(params, n_layers)

    in_p, hid_p, cls_p = _pad_dim(input_size), _pad_dim(hidden_size), _pad_dim(num_classes)

    tensors = [_pad2(w_in, in_p, hid_p).astype(compute_dtype),
               _pad2(b_in, 1, hid_p).astype(jnp.float32)]
    for (w, b) in layers:
        tensors.append(_pad2(w, hid_p, hid_p).astype(compute_dtype))
        tensors.append(_pad2(b, 1, hid_p).astype(jnp.float32))
    tensors.append(_pad2(w_out, hid_p, cls_p).astype(compute_dtype))
    # Padded class columns get a huge negative *f32* bias -> softmax prob 0.
    b_out_p = jnp.full((1, cls_p), -1e30, jnp.float32)
    b_out_p = b_out_p.at[:, :num_classes].set(
        b_out.astype(jnp.float32).reshape(1, num_classes))
    tensors.append(b_out_p)

    return dict(tensors=tuple(tensors), n_layers=n_layers,
                input_size=input_size, num_classes=num_classes,
                in_p=in_p, hid_p=hid_p, cls_p=cls_p,
                compute_dtype=compute_dtype)


# ---------------------------------------------------------------------------
# Forward pass
# ---------------------------------------------------------------------------
def neuralnet_forward_prepared(x, prep, *, tile_b=None, out_dtype=jnp.float32):
    batch, input_size = x.shape
    assert input_size == prep["input_size"]
    compute_dtype = prep["compute_dtype"]
    in_p, hid_p, cls_p = prep["in_p"], prep["hid_p"], prep["cls_p"]
    n_layers = prep["n_layers"]
    tensors = prep["tensors"]

    cdt = jnp.dtype(compute_dtype).itemsize
    odt = jnp.dtype(out_dtype).itemsize
    # bf16 activations pack [16,128] per vreg -> 16-row sublane alignment.
    sub = 16 if cdt == 2 else 8

    vmem_cap = _vmem_cap_bytes()
    param_bytes = sum(int(t.size) * t.dtype.itemsize for t in tensors)

    def vmem_need(tb):
        # Resident params (default 2x pipelining buffers) + double-buffered
        # x/out tiles + live f32 activations (+ bf16 cast copies) + headroom.
        io = 2 * tb * (in_p * cdt + cls_p * odt)
        act = 2 * tb * hid_p * (4 + cdt) + 2 * tb * cls_p * 4
        return 2 * param_bytes + io + act + 4 * 2**20

    b_sub = _round_up(batch, sub)
    if tile_b is None:
        # Large tiles amortize the ~0.35us/step overhead; >=2 steps when the
        # batch allows it so both v7x TensorCores get work.
        n_steps = pl.cdiv(b_sub, 512)
        if b_sub > sub:
            n_steps = max(n_steps, 2)
        tile_b = _round_up(pl.cdiv(b_sub, n_steps), sub)
        while tile_b > sub and vmem_need(tile_b) > vmem_cap:
            tile_b = _round_up(pl.cdiv(tile_b, 2), sub)
    tile_b = max(sub, _round_up(tile_b, sub))
    b_pad = _round_up(batch, tile_b)

    x_p = _pad2(x, b_pad, in_p).astype(compute_dtype)

    in_specs = [pl.BlockSpec((tile_b, in_p), lambda i: (i, 0))]
    # Full-array block + constant index_map -> weights stay VMEM-resident.
    in_specs += [pl.BlockSpec(t.shape, lambda i: (0, 0)) for t in tensors]
    out_spec = pl.BlockSpec((tile_b, cls_p), lambda i: (i, 0))

    vmem_limit = int(min(vmem_cap, max(vmem_need(tile_b), 16 * 2**20)))

    kernel = functools.partial(_mlp_kernel, n_layers, compute_dtype)

    out_p = pl.pallas_call(
        kernel,
        out_shape=jax.ShapeDtypeStruct((b_pad, cls_p), out_dtype),
        grid=(b_pad // tile_b,),
        in_specs=in_specs,
        out_specs=out_spec,
        compiler_params=pltpu.CompilerParams(
            dimension_semantics=("parallel",),
            vmem_limit_bytes=vmem_limit),
    )(x_p, *tensors)

    return out_p[:batch, :prep["num_classes"]]


def neuralnet_forward(x, params, n_layers, num_classes, *, tile_b=None,
                      compute_dtype=jnp.bfloat16, out_dtype=jnp.float32):
    """Convenience one-shot wrapper (prefer prepare_params + *_prepared)."""
    prep = prepare_params(params, n_layers, num_classes,
                          compute_dtype=compute_dtype)
    return neuralnet_forward_prepared(x, prep, tile_b=tile_b,
                                      out_dtype=out_dtype)


# ---------------------------------------------------------------------------
# Parameters & pure-JAX reference (unfolded, PyTorch eval-mode semantics)
# ---------------------------------------------------------------------------
def init_params(key, input_size, hidden_size, num_classes, n_layers):
    """Deterministic synthetic parameters (PyTorch Linear-style uniform init).
    Linear weights are stored pre-transposed as (in, out)."""
    def linear(key, fan_in, fan_out):
        k1, k2 = jax.random.split(key)
        bound = 1.0 / jnp.sqrt(fan_in)
        w = jax.random.uniform(k1, (fan_in, fan_out), jnp.float32, -bound, bound)
        b = jax.random.uniform(k2, (1, fan_out), jnp.float32, -bound, bound)
        return w, b

    keys = jax.random.split(key, n_layers + 2)
    w_in, b_in = linear(keys[0], input_size, hidden_size)
    layers = []
    for i in range(n_layers):
        w, b = linear(keys[1 + i], hidden_size, hidden_size)
        ks = jax.random.split(keys[1 + i], 4)
        layers.append(dict(
            w=w, b=b,
            gamma=1.0 + 0.1 * jax.random.normal(ks[0], (1, hidden_size), jnp.float32),
            beta=0.1 * jax.random.normal(ks[1], (1, hidden_size), jnp.float32),
            running_mean=0.1 * jax.random.normal(ks[2], (1, hidden_size), jnp.float32),
            running_var=1.0 + 0.1 * jax.random.uniform(ks[3], (1, hidden_size), jnp.float32),
        ))
    w_out, b_out = linear(keys[-1], hidden_size, num_classes)
    return dict(w_in=w_in, b_in=b_in, layers=layers, w_out=w_out, b_out=b_out)


def reference_forward(x, params, n_layers):
    """Pure-JAX reference of the original (unfolded) eval-mode forward."""
    h = jnp.maximum(x @ params["w_in"] + params["b_in"], 0.0)
    for i in range(n_layers):
        lp = params["layers"][i]
        h = jnp.maximum(h @ lp["w"] + lp["b"], 0.0)            # Linear -> ReLU
        h = (h - lp["running_mean"]) / jnp.sqrt(lp["running_var"] + 1e-5)
        h = h * lp["gamma"] + lp["beta"]                       # BatchNorm1d
        # Dropout: identity in eval mode.
    logits = h @ params["w_out"] + params["b_out"]
    return jax.nn.softmax(logits, axis=1)


if __name__ == "__main__":
    batch, input_size, hidden_size, num_classes, n_layers = 8, 16, 32, 8, 2

    key = jax.random.PRNGKey(0)
    kx, kp = jax.random.split(key)
    x = jax.random.normal(kx, (batch, input_size), jnp.float32)
    params = init_params(kp, input_size, hidden_size, num_classes, n_layers)

    ref = reference_forward(x, params, n_layers)

    # Default fast path: bf16 MXU inputs, f32 accumulate / bias / softmax.
    prep_bf16 = prepare_params(params, n_layers, num_classes,
                               compute_dtype=jnp.bfloat16)
    out_bf16 = jax.block_until_ready(neuralnet_forward_prepared(x, prep_bf16))
    assert out_bf16.shape == (batch, num_classes)
    assert jnp.allclose(out_bf16, ref, atol=3e-2, rtol=3e-2)
    assert jnp.allclose(jnp.sum(out_bf16, axis=1), 1.0, atol=1e-3)

    # f32 compute path, tight tolerance.
    prep_f32 = prepare_params(params, n_layers, num_classes,
                              compute_dtype=jnp.float32)
    out_f32 = jax.block_until_ready(neuralnet_forward_prepared(x, prep_f32))
    assert out_f32.shape == (batch, num_classes)
    assert jnp.allclose(out_f32, ref, atol=2e-3, rtol=2e-3)
    assert jnp.allclose(jnp.sum(out_f32, axis=1), 1.0, atol=1e-3)

    print("KERNEL_OK")
</pallas_src>

<mosaic_0001>
module attributes {stable_mosaic.version = 11 : i64} {
  func.func @_mlp_kernel(%arg0: i32, %arg1: memref<16x128xbf16, #tpu.memory_space<vmem>>, %arg2: memref<128x128xbf16, #tpu.memory_space<vmem>>, %arg3: memref<1x128xf32, #tpu.memory_space<vmem>>, %arg4: memref<128x128xbf16, #tpu.memory_space<vmem>>, %arg5: memref<1x128xf32, #tpu.memory_space<vmem>>, %arg6: memref<128x128xbf16, #tpu.memory_space<vmem>>, %arg7: memref<1x128xf32, #tpu.memory_space<vmem>>, %arg8: memref<128x128xbf16, #tpu.memory_space<vmem>>, %arg9: memref<1x128xf32, #tpu.memory_space<vmem>>, %arg10: memref<16x128xf32, #tpu.memory_space<vmem>>) attributes {dimension_semantics = [#tpu.dimension_semantics<parallel>], iteration_bounds = array<i64: 1>, scalar_prefetch = 0 : i64, scratch_operands = 0 : i64, tpu.core_type = #tpu.core_type<tc>, window_params = [{transform_indices = @transform_0, window_bounds = array<i64: 16, 128>}, {pipeline_mode = #tpu.pipeline_mode<synchronous>, transform_indices = @transform_1, window_bounds = array<i64: 128, 128>}, {pipeline_mode = #tpu.pipeline_mode<synchronous>, transform_indices = @transform_2, window_bounds = array<i64: 1, 128>}, {pipeline_mode = #tpu.pipeline_mode<synchronous>, transform_indices = @transform_3, window_bounds = array<i64: 128, 128>}, {pipeline_mode = #tpu.pipeline_mode<synchronous>, transform_indices = @transform_4, window_bounds = array<i64: 1, 128>}, {pipeline_mode = #tpu.pipeline_mode<synchronous>, transform_indices = @transform_5, window_bounds = array<i64: 128, 128>}, {pipeline_mode = #tpu.pipeline_mode<synchronous>, transform_indices = @transform_6, window_bounds = array<i64: 1, 128>}, {pipeline_mode = #tpu.pipeline_mode<synchronous>, transform_indices = @transform_7, window_bounds = array<i64: 128, 128>}, {pipeline_mode = #tpu.pipeline_mode<synchronous>, transform_indices = @transform_8, window_bounds = array<i64: 1, 128>}, {transform_indices = @transform_9, window_bounds = array<i64: 16, 128>}]} {
    %c0 = arith.constant 0 : index
    %c0_0 = arith.constant 0 : index
    %0 = vector.load %arg1[%c0, %c0_0] : memref<16x128xbf16, #tpu.memory_space<vmem>>, vector<16x128xbf16>
    %c0_1 = arith.constant 0 : index
    %c0_2 = arith.constant 0 : index
    %1 = vector.load %arg2[%c0_1, %c0_2] : memref<128x128xbf16, #tpu.memory_space<vmem>>, vector<128x128xbf16>
    %cst = arith.constant dense<0.000000e+00> : vector<16x128xf32>
    %2 = tpu.matmul %0, %1, %cst {dimension_numbers = #tpu.dot_dimension_numbers<[1], [0], [0], [1], [0, 0, 1, 1], [], []>} : vector<16x128xbf16>, vector<128x128xbf16>, vector<16x128xf32> -> vector<16x128xf32>
    %c0_3 = arith.constant 0 : index
    %c0_4 = arith.constant 0 : index
    %3 = vector.load %arg3[%c0_3, %c0_4] : memref<1x128xf32, #tpu.memory_space<vmem>>, vector<1x128xf32>
    %4 = vector.broadcast %3 : vector<1x128xf32> to vector<16x128xf32>
    %5 = arith.addf %2, %4 : vector<16x128xf32>
    %cst_5 = arith.constant 0.000000e+00 : f32
    %6 = vector.broadcast %cst_5 : f32 to vector<16x128xf32>
    %7 = arith.maximumf %5, %6 : vector<16x128xf32>
    %8 = arith.truncf %7 : vector<16x128xf32> to vector<16x128xbf16>
    %c0_6 = arith.constant 0 : index
    %c0_7 = arith.constant 0 : index
    %9 = vector.load %arg4[%c0_6, %c0_7] : memref<128x128xbf16, #tpu.memory_space<vmem>>, vector<128x128xbf16>
    %cst_8 = arith.constant dense<0.000000e+00> : vector<16x128xf32>
    %10 = tpu.matmul %8, %9, %cst_8 {dimension_numbers = #tpu.dot_dimension_numbers<[1], [0], [0], [1], [0, 0, 1, 1], [], []>} : vector<16x128xbf16>, vector<128x128xbf16>, vector<16x128xf32> -> vector<16x128xf32>
    %c0_9 = arith.constant 0 : index
    %c0_10 = arith.constant 0 : index
    %11 = vector.load %arg5[%c0_9, %c0_10] : memref<1x128xf32, #tpu.memory_space<vmem>>, vector<1x128xf32>
    %12 = vector.broadcast %11 : vector<1x128xf32> to vector<16x128xf32>
    %13 = arith.addf %10, %12 : vector<16x128xf32>
    %cst_11 = arith.constant 0.000000e+00 : f32
    %14 = vector.broadcast %cst_11 : f32 to vector<16x128xf32>
    %15 = arith.maximumf %13, %14 : vector<16x128xf32>
    %16 = arith.truncf %15 : vector<16x128xf32> to vector<16x128xbf16>
    %c0_12 = arith.constant 0 : index
    %c0_13 = arith.constant 0 : index
    %17 = vector.load %arg6[%c0_12, %c0_13] : memref<128x128xbf16, #tpu.memory_space<vmem>>, vector<128x128xbf16>
    %cst_14 = arith.constant dense<0.000000e+00> : vector<16x128xf32>
    %18 = tpu.matmul %16, %17, %cst_14 {dimension_numbers = #tpu.dot_dimension_numbers<[1], [0], [0], [1], [0, 0, 1, 1], [], []>} : vector<16x128xbf16>, vector<128x128xbf16>, vector<16x128xf32> -> vector<16x128xf32>
    %c0_15 = arith.constant 0 : index
    %c0_16 = arith.constant 0 : index
    %19 = vector.load %arg7[%c0_15, %c0_16] : memref<1x128xf32, #tpu.memory_space<vmem>>, vector<1x128xf32>
    %20 = vector.broadcast %19 : vector<1x128xf32> to vector<16x128xf32>
    %21 = arith.addf %18, %20 : vector<16x128xf32>
    %cst_17 = arith.constant 0.000000e+00 : f32
    %22 = vector.broadcast %cst_17 : f32 to vector<16x128xf32>
    %23 = arith.maximumf %21, %22 : vector<16x128xf32>
    %24 = arith.truncf %23 : vector<16x128xf32> to vector<16x128xbf16>
    %c0_18 = arith.constant 0 : index
    %c0_19 = arith.constant 0 : index
    %25 = vector.load %arg8[%c0_18, %c0_19] : memref<128x128xbf16, #tpu.memory_space<vmem>>, vector<128x128xbf16>
    %cst_20 = arith.constant dense<0.000000e+00> : vector<16x128xf32>
    %26 = tpu.matmul %24, %25, %cst_20 {dimension_numbers = #tpu.dot_dimension_numbers<[1], [0], [0], [1], [0, 0, 1, 1], [], []>} : vector<16x128xbf16>, vector<128x128xbf16>, vector<16x128xf32> -> vector<16x128xf32>
    %c0_21 = arith.constant 0 : index
    %c0_22 = arith.constant 0 : index
    %27 = vector.load %arg9[%c0_21, %c0_22] : memref<1x128xf32, #tpu.memory_space<vmem>>, vector<1x128xf32>
    %28 = vector.broadcast %27 : vector<1x128xf32> to vector<16x128xf32>
    %29 = arith.addf %26, %28 : vector<16x128xf32>
    %cst_23 = arith.constant dense<0xFF800000> : vector<16xf32>
    %30 = vector.multi_reduction <maximumf>, %29, %cst_23 [1] : vector<16x128xf32> to vector<16xf32>
    %31 = vector.shape_cast %30 : vector<16xf32> to vector<16x1xf32>
    %32 = vector.broadcast %31 : vector<16x1xf32> to vector<16x128xf32>
    %33 = arith.subf %29, %32 : vector<16x128xf32>
    %34 = math.exp %33 : vector<16x128xf32>
    %cst_24 = arith.constant dense<0.000000e+00> : vector<16xf32>
    %35 = vector.multi_reduction <add>, %34, %cst_24 [1] : vector<16x128xf32> to vector<16xf32>
    %36 = vector.shape_cast %35 : vector<16xf32> to vector<16x1xf32>
    %37 = vector.broadcast %36 : vector<16x1xf32> to vector<16x128xf32>
    %38 = arith.divf %34, %37 : vector<16x128xf32>
    %c0_25 = arith.constant 0 : index
    %c0_26 = arith.constant 0 : index
    %39 = vector.load %arg10[%c0_25, %c0_26] : memref<16x128xf32, #tpu.memory_space<vmem>>, vector<16x128xf32>
    tpu.vector_store %arg10[%c0_25, %c0_26], %38 {strides = array<i32>} : memref<16x128xf32, #tpu.memory_space<vmem>>, vector<16x128xf32>,
    return
  }
  func.func @transform_0(%arg0: i32) -> (i32, i32) {
    %c0_i32 = arith.constant 0 : i32
    %c0_i32_0 = arith.constant 0 : i32
    return %arg0, %c0_i32 : i32, i32
  }
  func.func @transform_1(%arg0: i32) -> (i32, i32) {
    %c0_i32 = arith.constant 0 : i32
    %c0_i32_0 = arith.constant 0 : i32
    %c0_i32_1 = arith.constant 0 : i32
    return %c0_i32, %c0_i32_0 : i32, i32
  }
  func.func @transform_2(%arg0: i32) -> (i32, i32) {
    %c0_i32 = arith.constant 0 : i32
    %c0_i32_0 = arith.constant 0 : i32
    %c0_i32_1 = arith.constant 0 : i32
    return %c0_i32, %c0_i32_0 : i32, i32
  }
  func.func @transform_3(%arg0: i32) -> (i32, i32) {
    %c0_i32 = arith.constant 0 : i32
    %c0_i32_0 = arith.constant 0 : i32
    %c0_i32_1 = arith.constant 0 : i32
    return %c0_i32, %c0_i32_0 : i32, i32
  }
  func.func @transform_4(%arg0: i32) -> (i32, i32) {
    %c0_i32 = arith.constant 0 : i32
    %c0_i32_0 = arith.constant 0 : i32
    %c0_i32_1 = arith.constant 0 : i32
    return %c0_i32, %c0_i32_0 : i32, i32
  }
  func.func @transform_5(%arg0: i32) -> (i32, i32) {
    %c0_i32 = arith.constant 0 : i32
    %c0_i32_0 = arith.constant 0 : i32
    %c0_i32_1 = arith.constant 0 : i32
    return %c0_i32, %c0_i32_0 : i32, i32
  }
  func.func @transform_6(%arg0: i32) -> (i32, i32) {
    %c0_i32 = arith.constant 0 : i32
    %c0_i32_0 = arith.constant 0 : i32
    %c0_i32_1 = arith.constant 0 : i32
    return %c0_i32, %c0_i32_0 : i32, i32
  }
  func.func @transform_7(%arg0: i32) -> (i32, i32) {
    %c0_i32 = arith.constant 0 : i32
    %c0_i32_0 = arith.constant 0 : i32
    %c0_i32_1 = arith.constant 0 : i32
    return %c0_i32, %c0_i32_0 : i32, i32
  }
  func.func @transform_8(%arg0: i32) -> (i32, i32) {
    %c0_i32 = arith.constant 0 : i32
    %c0_i32_0 = arith.constant 0 : i32
    %c0_i32_1 = arith.constant 0 : i32
    return %c0_i32, %c0_i32_0 : i32, i32
  }
  func.func @transform_9(%arg0: i32) -> (i32, i32) {
    %c0_i32 = arith.constant 0 : i32
    %c0_i32_0 = arith.constant 0 : i32
    return %arg0, %c0_i32 : i32, i32
  }
}

</mosaic_0001>

<bundles_post_ra>
// kernel: tpu_custom_call.1
= control target key start
LH: loop header
LB: loop body
LE: loop exit
PB: predicated region body
PF: predicated region fallthrough
CT: control target
= control target key end

     0   :  { %14 = vsyncpa [#allocation3], 0  ;;  %s1167_s0 = inlined_call_operand.hbm [shape: bf16[16,128], index: 0, kind: input, shape index: {}]   ;;  %s1168_s1 = inlined_call_operand.hbm [shape: bf16[128,128], index: 1, kind: input, shape index: {}]   ;;  %s1169_s2 = inlined_call_operand.vmem [shape: f32[1,128], index: 2, kind: input, shape index: {}]   ;;  %s1170_s3 = inlined_call_operand.hbm [shape: bf16[128,128], index: 3, kind: input, shape index: {}]   ;;  %s1171_s4 = inlined_call_operand.vmem [shape: f32[1,128], index: 4, kind: input, shape index: {}]   ;;  %s1172_s5 = inlined_call_operand.hbm [shape: bf16[128,128], index: 5, kind: input, shape index: {}]   ;;  %s1173_s6 = inlined_call_operand.vmem [shape: f32[1,128], index: 6, kind: input, shape index: {}]   ;;  %s1174_s7 = inlined_call_operand.hbm [shape: bf16[128,128], index: 7, kind: input, shape index: {}]   ;;  %s1175_s8 = inlined_call_operand.vmem [shape: f32[1,128], index: 8, kind: input, shape index: {}]   ;;  %s1176_s9 = inlined_call_operand.hbm [shape: f32[16,128], index: 9, kind: output, shape index: {}]  }
   0x1   :  { %15 = vsyncpa [#allocation6], 0 }
   0x2   :  { %16 = vsyncpa [#allocation9], 0 }
   0x3   :  { %17 = vsyncpa [#allocation4], 0  ;;  %s952_s30 = smov [#allocation5]   ;;  %s953_s11 = smov [#allocation8]  }
   0x4   :  { %s35_s10 = sshll.u32 %s952_s30, 4  ;;  %s63_s12 = sshll.u32 %s953_s11, 4  ;;  %s36_s10 = int_to_ptr.vmem [resolvable:$true] %s35_s10  ;;  %s1014_s12 = int_to_ptr.vmem [resolvable:$true] %s63_s12 }
   0x5   :  { %s812_s15 = scalar_lea.hbm %s1168_s1, 1024 }
   0x6   :  { %p813_p0 = scmp.ne.s32.totalorder %s1168_s1, %s812_s15  ;;  %p816_p1 = scmp.lt.u32.totalorder %s812_s15, %s1168_s1 }
   0x8   :  { %p818_p2 = pnand %p816_p1, %p813_p0 }
   0xa   :  { %821 = shalt.err (!%p818_p2)
}
   0xb   :  { %s822_s20 = scalar_lea.vmem %s36_s10, 1024  ;;  %p827_p4 = scmp.lt.s32.totalorder %s36_s10, %s36_s10 }
   0xc   :  { %p823_p3 = scmp.ne.s32.totalorder %s36_s10, %s822_s20  ;;  %p828_p5 = scmp.lt.s32.totalorder %s822_s20, %s822_s20 }
   0xe   :  { %p829_p6 = por %p828_p5, %p827_p4 }
  0x10   :  { %p830_p7 = pnand %p829_p6, %p823_p3 }
  0x12   :  { %833 = shalt.err (!%p830_p7)
}
  0x13   :  { %s954_s21 = smov 64   ;;  %s955_s22 = smov 4  }
  0x14   :  { %41 = dma.hbm_to_vmem [thread:$0]  %s1168_s1, 1024, %s36_s10, [#allocation6], %s954_s21, %s954_s21, %s955_s22  }
  0x15   :  { %s834_s27 = scalar_lea.hbm %s1172_s5, 1024 }
  0x16   :  { %p835_p8 = scmp.ne.s32.totalorder %s1172_s5, %s834_s27  ;;  %p838_p9 = scmp.lt.u32.totalorder %s834_s27, %s1172_s5 }
  0x18   :  { %p840_p10 = pnand %p838_p9, %p835_p8 }
  0x1a   :  { %843 = shalt.err (!%p840_p10)
}
  0x1b   :  { %s844_s13 = scalar_lea.vmem %s1014_s12, 1024  ;;  %p849_p12 = scmp.lt.s32.totalorder %s1014_s12, %s1014_s12 }
  0x1c   :  { %p845_p11 = scmp.ne.s32.totalorder %s1014_s12, %s844_s13  ;;  %p850_p13 = scmp.lt.s32.totalorder %s844_s13, %s844_s13 }
  0x1e   :  { %p851_p0 = por %p850_p13, %p849_p12 }
  0x20   :  { %p852_p1 = pnand %p851_p0, %p845_p11 }
  0x22   :  { %855 = shalt.err (!%p852_p1)
}
  0x23   :  { %69 = dma.hbm_to_vmem [thread:$0]  %s1172_s5, 1024, %s1014_s12, [#allocation9], %s954_s21, %s954_s21, %s955_s22  }
  0x24   :  { %s956_s14 = smov [#allocation2]   ;;  %s957_s16 = smov [#allocation7]  }
  0x25   :  { %s23_s15 = sshll.u32 %s956_s14, 4  ;;  %s49_s17 = sshll.u32 %s957_s16, 4  ;;  %s24_s15 = int_to_ptr.vmem [resolvable:$true] %s23_s15  ;;  %s1051_s17 = int_to_ptr.vmem [resolvable:$true] %s49_s17 }
  0x26   :  { %s856_s20 = scalar_lea.hbm %s1167_s0, 128 }
  0x27   :  { %p857_p2 = scmp.ne.s32.totalorder %s1167_s0, %s856_s20  ;;  %p860_p3 = scmp.lt.u32.totalorder %s856_s20, %s1167_s0 }
  0x29   :  { %p862_p4 = pnand %p860_p3, %p857_p2 }
  0x2b   :  { %865 = shalt.err (!%p862_p4)
}
  0x2c   :  { %s866_s5 = scalar_lea.vmem %s24_s15, 128  ;;  %p871_p6 = scmp.lt.s32.totalorder %s24_s15, %s24_s15 }
  0x2d   :  { %p867_p5 = scmp.ne.s32.totalorder %s24_s15, %s866_s5  ;;  %p872_p7 = scmp.lt.s32.totalorder %s866_s5, %s866_s5 }
  0x2f   :  { %p873_p8 = por %p872_p7, %p871_p6 }
  0x31   :  { %p874_p9 = pnand %p873_p8, %p867_p5 }
  0x33   :  { %877 = shalt.err (!%p874_p9)
}
  0x34   :  { %29 = dma.hbm_to_vmem [thread:$0]  %s1167_s0, 128, %s24_s15, [#allocation3], %s954_s21, %s954_s21, %s955_s22  }
  0x35   :  { %s878_s30 = scalar_lea.hbm %s1170_s3, 1024 }
  0x36   :  { %p879_p10 = scmp.ne.s32.totalorder %s1170_s3, %s878_s30  ;;  %p882_p11 = scmp.lt.u32.totalorder %s878_s30, %s1170_s3 }
  0x38   :  { %p884_p12 = pnand %p882_p11, %p879_p10 }
  0x3a   :  { %887 = shalt.err (!%p884_p12)
}
  0x3b   :  { %s888_s14 = scalar_lea.vmem %s1051_s17, 1024  ;;  %p893_p0 = scmp.lt.s32.totalorder %s1051_s17, %s1051_s17 }
  0x3c   :  { %p889_p13 = scmp.ne.s32.totalorder %s1051_s17, %s888_s14  ;;  %p894_p1 = scmp.lt.s32.totalorder %s888_s14, %s888_s14 }
  0x3e   :  { %p895_p2 = por %p894_p1, %p893_p0 }
  0x40   :  { %p896_p3 = pnand %p895_p2, %p889_p13 }
  0x42   :  { %899 = shalt.err (!%p896_p3)
}
  0x43   :  { %55 = dma.hbm_to_vmem [thread:$0]  %s1170_s3, 1024, %s1051_s17, [#allocation6], %s954_s21, %s954_s21, %s955_s22  }
  0x44   :  { %s958_s16 = smov [#allocation10]   ;;  %s900_s23 = scalar_lea.hbm %s1174_s7, 1024 }
  0x45   :  { %s77_s18 = sshll.u32 %s958_s16, 4  ;;  %p901_p4 = scmp.ne.s32.totalorder %s1174_s7, %s900_s23  ;;  %s78_s18 = int_to_ptr.vmem [resolvable:$true] %s77_s18 }
  0x46   :  { %p904_p5 = scmp.lt.u32.totalorder %s900_s23, %s1174_s7 }
  0x48   :  { %p906_p6 = pnand %p904_p5, %p901_p4 }
  0x4a   :  { %909 = shalt.err (!%p906_p6)
}
  0x4b   :  { %s910_s12 = scalar_lea.vmem %s78_s18, 1024  ;;  %p915_p8 = scmp.lt.s32.totalorder %s78_s18, %s78_s18 }
  0x4c   :  { %p911_p7 = scmp.ne.s32.totalorder %s78_s18, %s910_s12  ;;  %p916_p9 = scmp.lt.s32.totalorder %s910_s12, %s910_s12 }
  0x4e   :  { %p917_p10 = por %p916_p9, %p915_p8 }
  0x50   :  { %p918_p11 = pnand %p917_p10, %p911_p7 }
  0x52   :  { %921 = shalt.err (!%p918_p11)
}
  0x53   :  { %83 = dma.hbm_to_vmem [thread:$0]  %s1174_s7, 1024, %s78_s18, [#allocation9], %s954_s21, %s954_s21, %s955_s22  }
  0x54   :  { %944 = dma.done.wait [#allocation3], 128  }
  0x55   :  { %945 = vsyncadd [#allocation3], 4294967168 }
  0x56   :  { %946 = dma.done.wait [#allocation6], 2048  }
  0x57   :  { %947 = vsyncadd [#allocation6], 4294965248 }
  0x58   :  { %948 = dma.done.wait [#allocation9], 2048  }
  0x59   :  { %949 = vsyncadd [#allocation9], 4294965248  ;;  %v959_v0 = vmov 0.0   ;;  %vm960_vm0 = vmmov 0   ;;  %v771_v1 = vld [vmem:[#allocation5] sm:$0xff]   ;;  %v772_v2 = vld [vmem:[#allocation5 + $0x8] sm:$0xff]  }
  0x5a   :  { %679 = vmatprep.subr.bf16.mxu0 %v959_v0  ;;  %695 = vmatprep.mubr.msk.bf16.mxu0 %vm960_vm0, %v959_v0  ;;  %v773_v3 = vld [vmem:[#allocation5 + $0x10] sm:$0xff]   ;;  %v780_v4 = vld [vmem:[#allocation7] sm:$0xff]   ;;  %v774_v5 = vld [vmem:[#allocation5 + $0x18] sm:$0xff]  }
  0x5b   :  { %699 = vmatprep.subr.bf16.mxu1 %v959_v0  ;;  %715 = vmatprep.mubr.msk.bf16.mxu1 %vm960_vm0, %v959_v0  ;;  %v781_v6 = vld [vmem:[#allocation7 + $0x8] sm:$0xff]   ;;  %v775_v7 = vld [vmem:[#allocation5 + $0x20] sm:$0xff]   ;;  %v782_v8 = vld [vmem:[#allocation7 + $0x10] sm:$0xff]  }
  0x5c   :  { %680 = vmatpush3.bf16.msra.mxu0 %v771_v1  ;;  %700 = vmatpush3.bf16.msra.mxu1 %v780_v4  ;;  %v776_v9 = vld [vmem:[#allocation5 + $0x28] sm:$0xff]   ;;  %v783_v10 = vld [vmem:[#allocation7 + $0x18] sm:$0xff]   ;;  %v777_v11 = vld [vmem:[#allocation5 + $0x30] sm:$0xff]  }
  0x5d   :  { %681 = vmatprep.subr.bf16.mxu0 %v959_v0  ;;  %701 = vmatprep.subr.bf16.mxu1 %v959_v0  ;;  %v784_v12 = vld [vmem:[#allocation7 + $0x20] sm:$0xff]   ;;  %v778_v13 = vld [vmem:[#allocation5 + $0x38] sm:$0xff]   ;;  %v785_v14 = vld [vmem:[#allocation7 + $0x28] sm:$0xff]  }
  0x5e   :  { %v779_v15 = vld [vmem:[#allocation2] sm:$0xff]   ;;  %v786_v16 = vld [vmem:[#allocation7 + $0x30] sm:$0xff]   ;;  %v788_v18 = vld [vmem:[#allocation8] sm:$0xff]  }
  0x5f   :  { %v787_v17 = vld [vmem:[#allocation7 + $0x38] sm:$0xff]   ;;  %v789_v19 = vld [vmem:[#allocation8 + $0x8] sm:$0xff]   ;;  %v790_v20 = vld [vmem:[#allocation8 + $0x10] sm:$0xff]  }
  0x60   :  { %682 = vmatpush3.bf16.msra.mxu0 %v772_v2  ;;  %702 = vmatpush3.bf16.msra.mxu1 %v781_v6  ;;  %v791_v21 = vld [vmem:[#allocation8 + $0x18] sm:$0xff]   ;;  %v792_v22 = vld [vmem:[#allocation8 + $0x20] sm:$0xff]   ;;  %v793_v23 = vld [vmem:[#allocation8 + $0x28] sm:$0xff]  }
  0x61   :  { %683 = vmatprep.subr.bf16.mxu0 %v959_v0  ;;  %703 = vmatprep.subr.bf16.mxu1 %v959_v0  ;;  %v606_v24 = vld [vmem:[%s1169_s2] ss:$0 sm:$0xff]  ;;  %v794_v34 = vld [vmem:[#allocation8 + $0x30] sm:$0xff]   ;;  %v796_v36 = vld [vmem:[#allocation10] sm:$0xff]  }
  0x62   :  { %v795_v35 = vld [vmem:[#allocation8 + $0x38] sm:$0xff]   ;;  %v797_v37 = vld [vmem:[#allocation10 + $0x8] sm:$0xff]   ;;  %v798_v38 = vld [vmem:[#allocation10 + $0x10] sm:$0xff]  }
  0x63   :  { %v799_v39 = vld [vmem:[#allocation10 + $0x18] sm:$0xff]   ;;  %v800_v40 = vld [vmem:[#allocation10 + $0x20] sm:$0xff]   ;;  %v801_v41 = vld [vmem:[#allocation10 + $0x28] sm:$0xff]  }
  0x64   :  { %684 = vmatpush3.bf16.msra.mxu0 %v773_v3  ;;  %704 = vmatpush3.bf16.msra.mxu1 %v782_v8  ;;  %v616_v42 = vld [vmem:[%s1171_s4] ss:$0 sm:$0xff]  ;;  %v802_v52 = vld [vmem:[#allocation10 + $0x30] sm:$0xff]  }
  0x65   :  { %685 = vmatprep.subr.bf16.mxu0 %v959_v0  ;;  %705 = vmatprep.subr.bf16.mxu1 %v959_v0  ;;  %v803_v53 = vld [vmem:[#allocation10 + $0x38] sm:$0xff]  }
  0x66   :  { %v625_v54 = vld [vmem:[%s1173_s6] ss:$0 sm:$0xff]  ;;  %s961_s6 = smov [#allocation11]  }
  0x68   :  { %686 = vmatpush3.bf16.msra.mxu0 %v774_v5  ;;  %706 = vmatpush3.bf16.msra.mxu1 %v783_v10 }
  0x69   :  { %687 = vmatprep.subr.bf16.mxu0 %v959_v0  ;;  %707 = vmatprep.subr.bf16.mxu1 %v959_v0 }
  0x6c   :  { %688 = vmatpush3.bf16.msra.mxu0 %v775_v7  ;;  %708 = vmatpush3.bf16.msra.mxu1 %v784_v12 }
  0x6d   :  { %689 = vmatprep.subr.bf16.mxu0 %v959_v0  ;;  %709 = vmatprep.subr.bf16.mxu1 %v959_v0 }
  0x70   :  { %690 = vmatpush3.bf16.msra.mxu0 %v776_v9  ;;  %710 = vmatpush3.bf16.msra.mxu1 %v785_v14 }
  0x71   :  { %691 = vmatprep.subr.bf16.mxu0 %v959_v0  ;;  %711 = vmatprep.subr.bf16.mxu1 %v959_v0 }
  0x74   :  { %692 = vmatpush3.bf16.msra.mxu0 %v777_v11  ;;  %712 = vmatpush3.bf16.msra.mxu1 %v786_v16 }
  0x75   :  { %693 = vmatprep.subr.bf16.mxu0 %v959_v0  ;;  %713 = vmatprep.subr.bf16.mxu1 %v959_v0 }
  0x78   :  { %694 = vmatpush3.bf16.msra.mxu0 %v778_v13  ;;  %714 = vmatpush3.bf16.msra.mxu1 %v787_v17 }
  0x79   :  { %719 = vmatprep.subr.bf16.mxu0 %v959_v0  ;;  %739 = vmatprep.subr.bf16.mxu1 %v959_v0 }
  0x7b   :  { %696 = vmatmul.mubr.bf16.vlgmr.msra.gmra.mrb[0].mxu0 %v779_v15 }
  0x7c   :  { %735 = vmatprep.mubr.msk.bf16.mxu0 %vm960_vm0, %v959_v0  ;;  %720 = vmatpush3.bf16.msra.mxu0 %v788_v18 }
  0x7d   :  { %721 = vmatprep.subr.bf16.mxu0 %v959_v0 }
  0x80   :  { %722 = vmatpush3.bf16.msra.mxu0 %v789_v19 }
  0x81   :  { %723 = vmatprep.subr.bf16.mxu0 %v959_v0 }
  0x84   :  { %724 = vmatpush3.bf16.msra.mxu0 %v790_v20 }
  0x85   :  { %725 = vmatprep.subr.bf16.mxu0 %v959_v0 }
  0x88   :  { %726 = vmatpush3.bf16.msra.mxu0 %v791_v21 }
  0x89   :  { %727 = vmatprep.subr.bf16.mxu0 %v959_v0 }
  0x8c   :  { %728 = vmatpush3.bf16.msra.mxu0 %v792_v22 }
  0x8d   :  { %729 = vmatprep.subr.bf16.mxu0 %v959_v0 }
  0x90   :  { %730 = vmatpush3.bf16.msra.mxu0 %v793_v23 }
  0x91   :  { %731 = vmatprep.subr.bf16.mxu0 %v959_v0 }
  0x94   :  { %732 = vmatpush3.bf16.msra.mxu0 %v794_v34 }
  0x95   :  { %733 = vmatprep.subr.bf16.mxu0 %v959_v0 }
  0x98   :  { %734 = vmatpush3.bf16.msra.mxu0 %v795_v35 }
 0x14e   :  { %v215_v25 = vpop.f32.mrb[0].mxu0 }
 0x14f   :  { %v216_v26 = vadd.f32 %v606_v24, %v215_v25  ;;  %v697_v27 = vpop.f32.mrb[1].mxu0 }
 0x150   :  { %v218_v28 = vpop.f32.mrb[2].mxu0 }
 0x151   :  { %v219_v29 = vadd.f32 %v606_v24, %v218_v28  ;;  %v698_v30 = vpop.f32.mrb[3].mxu0  ;;  %v222_v31 = vmax.f32 %v216_v26, 0.0 }
 0x153   :  { %v223_v32 = vmax.f32 %v219_v29, 0.0 }
 0x155   :  { %v224_v33 = vpack.c.bf16 %v223_v32, %v222_v31 }
 0x157   :  { %716 = vmatmul.mubr.bf16.vlgmr.msra.gmra.mrb[0].mxu1 %v224_v33 }
 0x158   :  { %755 = vmatprep.mubr.msk.bf16.mxu1 %vm960_vm0, %v959_v0  ;;  %740 = vmatpush3.bf16.msra.mxu1 %v796_v36 }
 0x159   :  { %741 = vmatprep.subr.bf16.mxu1 %v959_v0 }
 0x15c   :  { %742 = vmatpush3.bf16.msra.mxu1 %v797_v37 }
 0x15d   :  { %743 = vmatprep.subr.bf16.mxu1 %v959_v0 }
 0x160   :  { %744 = vmatpush3.bf16.msra.mxu1 %v798_v38 }
 0x161   :  { %745 = vmatprep.subr.bf16.mxu1 %v959_v0 }
 0x164   :  { %746 = vmatpush3.bf16.msra.mxu1 %v799_v39 }
 0x165   :  { %747 = vmatprep.subr.bf16.mxu1 %v959_v0 }
 0x168   :  { %748 = vmatpush3.bf16.msra.mxu1 %v800_v40 }
 0x169   :  { %749 = vmatprep.subr.bf16.mxu1 %v959_v0 }
 0x16c   :  { %750 = vmatpush3.bf16.msra.mxu1 %v801_v41 }
 0x16d   :  { %751 = vmatprep.subr.bf16.mxu1 %v959_v0 }
 0x170   :  { %752 = vmatpush3.bf16.msra.mxu1 %v802_v52 }
 0x171   :  { %753 = vmatprep.subr.bf16.mxu1 %v959_v0  ;;  %v634_v0 = vld [vmem:[%s1175_s8] ss:$0 sm:$0xff]  ;;  %s592_s8 = sshll.u32 %s961_s6, 4  ;;  %s593_s8 = int_to_ptr.vmem [resolvable:$true] %s592_s8 }
 0x172   :  { %s922_s30 = scalar_lea.vmem %s593_s8, 256  ;;  %p927_p13 = scmp.lt.s32.totalorder %s593_s8, %s593_s8 }
 0x173   :  { %p923_p12 = scmp.ne.s32.totalorder %s593_s8, %s922_s30  ;;  %p928_p0 = scmp.lt.s32.totalorder %s922_s30, %s922_s30 }
 0x174   :  { %754 = vmatpush3.bf16.msra.mxu1 %v803_v53 }
 0x175   :  { %p929_p1 = por %p928_p0, %p927_p13 }
 0x177   :  { %p930_p2 = pnand %p929_p1, %p923_p12 }
 0x22a   :  { %v330_v43 = vpop.f32.mrb[0].mxu1 }
 0x22b   :  { %v331_v44 = vadd.f32 %v616_v42, %v330_v43  ;;  %v717_v45 = vpop.f32.mrb[1].mxu1 }
 0x22c   :  { %v333_v46 = vpop.f32.mrb[2].mxu1 }
 0x22d   :  { %v334_v47 = vadd.f32 %v616_v42, %v333_v46  ;;  %v718_v48 = vpop.f32.mrb[3].mxu1  ;;  %v337_v49 = vmax.f32 %v331_v44, 0.0 }
 0x22f   :  { %v338_v50 = vmax.f32 %v334_v47, 0.0 }
 0x231   :  { %v339_v51 = vpack.c.bf16 %v338_v50, %v337_v49 }
 0x233   :  { %736 = vmatmul.mubr.bf16.vlgmr.msra.gmra.mrb[4].mxu0 %v339_v51 }
 0x306   :  { %v445_v55 = vpop.f32.mrb[4].mxu0 }
 0x307   :  { %v446_v56 = vadd.f32 %v625_v54, %v445_v55  ;;  %v737_v57 = vpop.f32.mrb[5].mxu0 }
 0x308   :  { %v448_v58 = vpop.f32.mrb[6].mxu0 }
 0x309   :  { %v449_v59 = vadd.f32 %v625_v54, %v448_v58  ;;  %v738_v60 = vpop.f32.mrb[7].mxu0  ;;  %v452_v61 = vmax.f32 %v446_v56, 0.0 }
 0x30b   :  { %v453_v62 = vmax.f32 %v449_v59, 0.0 }
 0x30d   :  { %v454_v63 = vpack.c.bf16 %v453_v62, %v452_v61 }
 0x30f   :  { %756 = vmatmul.mubr.bf16.vlgmr.msra.gmra.mrb[4].mxu1 %v454_v63 }
 0x3e2   :  { %v560_v1 = vpop.f32.mrb[4].mxu1 }
 0x3e3   :  { %v561_v2 = vadd.f32 %v634_v0, %v560_v1  ;;  %v757_v3 = vpop.f32.mrb[5].mxu1 }
 0x3e4   :  { %v563_v4 = vpop.f32.mrb[6].mxu1 }
 0x3e5   :  { %567 = vmax.xlane.f32.xlu0 %v561_v2  ;;  %v758_v5 = vpop.f32.mrb[7].mxu1  ;;  %v564_v6 = vadd.f32 %v634_v0, %v563_v4 }
 0x3e9   :  { %569 = vmax.xlane.f32.xlu0 %v564_v6 }
 0x472   :  { %v568_v7 = vpop.xlane.xlu0 %567 }
 0x473   :  { %v571_v8 = vsub.f32 %v561_v2, %v568_v7 }
 0x475   :  { %v573_v9 = vmul.f32 1.442695, %v571_v8 }
 0x476   :  { %v570_v10 = vpop.xlane.xlu0 %569 }
 0x477   :  { %804 = vpow2.f32 %v573_v9  ;;  %v572_v11 = vsub.f32 %v564_v6, %v570_v10 }
 0x479   :  { %v575_v12 = vmul.f32 1.442695, %v572_v11 }
 0x47b   :  { %806 = vpow2.f32 %v575_v12 }
 0x481   :  { %v805_v13 = vpop.eup %804 }
 0x482   :  { %577 = vadd.xlane.f32.xlu1 %v805_v13 }
 0x485   :  { %v807_v14 = vpop.eup %806 }
 0x486   :  { %579 = vadd.xlane.f32.xlu1 %v807_v14 }
 0x50f   :  { %v578_v15 = vpop.xlane.xlu1 %577 }
 0x510   :  { %808 = vrcp.f32 %v578_v15 }
 0x513   :  { %v580_v16 = vpop.xlane.xlu1 %579 }
 0x514   :  { %810 = vrcp.f32 %v580_v16 }
 0x51a   :  { %v809_v17 = vpop.eup %808 }
 0x51b   :  { %v582_v18 = vmul.f32 %v809_v17, %v805_v13 }
 0x51d   :  { %585 = vst [vmem:[#allocation11] sm:$0xff] %v582_v18 }
 0x51e   :  { %v811_v19 = vpop.eup %810 }
 0x51f   :  { %v584_v20 = vmul.f32 %v811_v19, %v807_v14 }
 0x521   :  { %586 = vst [vmem:[#allocation11 + $0x8] sm:$0xff] %v584_v20 }
 0x522   :  { %933 = shalt.err (!%p930_p2)
}
 0x523   :  { %s934_s1 = scalar_lea.hbm %s1176_s9, 256 }
 0x524   :  { %p935_p3 = scmp.ne.s32.totalorder %s1176_s9, %s934_s1  ;;  %p938_p4 = scmp.lt.u32.totalorder %s934_s1, %s1176_s9 }
 0x526   :  { %p940_p5 = pnand %p938_p4, %p935_p3 }
 0x528   :  { %943 = shalt.err (!%p940_p5)
}
 0x529   :  { %s962_s16 = smov 128   ;;  %s963_s18 = smov 8  }
 0x52a   :  { %598 = dma.vmem_to_hbm [thread:$0]  %s593_s8, 256, %s1176_s9, [#allocation4], %s962_s16, %s962_s16, %s963_s18  }
 0x52b   :  { %950 = dma.done.wait [#allocation4], 256  }
 0x52c   :  { %951 = vsyncadd [#allocation4], 4294967040 }
 0x52d   :  { %602 = vsyncpa [#allocation3], 1 }
 0x52e   :  { %603 = vsyncpa [#allocation6], 1 }
 0x52f   :  { %604 = vsyncpa [#allocation9], 1 }
 0x530   :  { %605 = vsyncpa [#allocation4], 1 }

</bundles_post_ra>
